<compile_context>
chip_gen: v7x
topology: tpu7x:2x2x1
jax: 0.10.0
libtpu: 0.0.40
codegen_flags: <defaults>
</compile_context>

<pallas_src>
import functools

import jax
import jax.numpy as jnp
from jax.experimental import pallas as pl
from jax.experimental.pallas import tpu as pltpu


def _se_kernel(x_ref, w1_ref, w2_ref, o_ref, *, inv_hw):
    # x_ref block: (TB, C, HW); w1: (hidden, C); w2: (C, hidden).
    x = x_ref[...]                                             # native dtype
    # Squeeze: global average pool with f32 accumulation inside the lane
    # reduce (no blanket upcast of the big tile).
    y = jnp.sum(x, axis=-1, dtype=jnp.float32) * inv_hw        # (TB, C) f32
    # Excite, batched over the TB rows. The einsums contract the PyTorch
    # (out, in) Linear layouts directly (y @ w1.T, then h @ w2.T).
    h = jnp.einsum("bc,hc->bh", y, w1_ref[...],
                   preferred_element_type=jnp.float32)         # (TB, hidden)
    h = jnp.maximum(h, 0.0)
    s = jnp.einsum("bh,ch->bc", h, w2_ref[...],
                   preferred_element_type=jnp.float32)         # (TB, C)
    s = jax.nn.sigmoid(s)
    # Scale: per-(batch, channel) gate broadcast across the spatial lanes,
    # in the activation's own dtype.
    o_ref[...] = x * s.astype(x.dtype)[:, :, None]


def _vmem_capacity_bytes() -> int:
    """Per-core VMEM capacity; conservative v7x fallback if the query fails."""
    try:
        return int(pltpu.get_tpu_info().vmem_capacity_bytes)
    except Exception:
        return 64 * 1024 * 1024


def _choose_tb(batch: int, per_batch_bytes: int,
               target_bytes: int, min_grid: int) -> int:
    """Largest divisor of `batch` whose block stays under the roofline-plateau
    byte target, preferring at least `min_grid` grid steps for pipelining and
    megacore sharding."""
    divisors = [d for d in range(1, batch + 1) if batch % d == 0]
    cap_ok = [d for d in divisors if d * per_batch_bytes <= target_bytes]
    both_ok = [d for d in cap_ok if batch // d >= min_grid]
    if both_ok:
        return max(both_ok)
    if cap_ok:
        return max(cap_ok)
    return 1


def se_layer(x, w1, w2):
    """Squeeze-and-Excitation forward.

    x:  (B, C, H, W) activations.
    w1: (hidden, C)  first Linear weight  (PyTorch layout, no bias).
    w2: (C, hidden)  second Linear weight (PyTorch layout, no bias).
    """
    B, C, H, W = x.shape
    hidden = w1.shape[0]
    HW = H * W

    x_flat = x.reshape(B, C, HW)
    itemsize = jnp.dtype(x.dtype).itemsize
    per_batch_bytes = C * HW * itemsize
    w_bytes = 2 * hidden * C * jnp.dtype(w1.dtype).itemsize

    # Block sizing: ~3 MiB blocks hit the HBM roofline plateau; >= 8 grid
    # steps keep the pipeline (and v7x's two TensorCores) busy.
    target_block_bytes = 3 << 20
    tb = _choose_tb(B, per_batch_bytes, target_block_bytes, min_grid=8)
    block_bytes = tb * per_batch_bytes

    # Scoped VMEM: cover the double-buffered in+out blocks plus weights, but
    # never exceed physical capacity (64 MiB on v7x) minus headroom.
    vmem_cap = _vmem_capacity_bytes()
    needed = 4 * block_bytes + 2 * w_bytes + (2 << 20)
    vmem_limit = int(min(vmem_cap - (4 << 20), max(needed, 16 << 20)))

    kernel = functools.partial(_se_kernel, inv_hw=float(1.0 / HW))

    cost = pl.CostEstimate(
        flops=int(2 * B * C * HW + 4 * B * C * hidden),
        transcendentals=int(B * C),
        bytes_accessed=int(2 * B * C * HW * itemsize + w_bytes),
    )

    out_flat = pl.pallas_call(
        kernel,
        out_shape=jax.ShapeDtypeStruct((B, C, HW), x.dtype),
        grid_spec=pltpu.PrefetchScalarGridSpec(
            num_scalar_prefetch=0,
            grid=(B // tb,),
            in_specs=[
                pl.BlockSpec((tb, C, HW), lambda b: (b, 0, 0)),
                pl.BlockSpec((hidden, C), lambda b: (0, 0)),
                pl.BlockSpec((C, hidden), lambda b: (0, 0)),
            ],
            out_specs=pl.BlockSpec((tb, C, HW), lambda b: (b, 0, 0)),
        ),
        compiler_params=pltpu.CompilerParams(
            dimension_semantics=("parallel",),
            vmem_limit_bytes=vmem_limit,
        ),
        input_output_aliases={0: 0},
        cost_estimate=cost,
    )(x_flat, w1, w2)

    return out_flat.reshape(B, C, H, W)


def se_layer_ref(x, w1, w2):
    """Pure-JAX reference matching the PyTorch SELayer forward."""
    y = jnp.mean(x, axis=(2, 3))                    # (B, C)
    y = jnp.maximum(y @ w1.T, 0.0)                  # (B, hidden)
    y = jax.nn.sigmoid(y @ w2.T)                    # (B, C)
    return x * y[:, :, None, None]


if __name__ == "__main__":
    # SELayer config matching the module: channel=32, reduction=16 -> hidden=2
    B, C, H, W = 2, 32, 16, 16
    reduction = 16
    hidden = C // reduction

    key = jax.random.PRNGKey(0)
    kx, k1, k2 = jax.random.split(key, 3)
    x = jax.random.normal(kx, (B, C, H, W), dtype=jnp.float32)
    # Deterministic synthetic weights (PyTorch Linear layout: (out, in), no bias)
    w1 = jax.random.normal(k1, (hidden, C), dtype=jnp.float32) * 0.1
    w2 = jax.random.normal(k2, (C, hidden), dtype=jnp.float32) * 0.1

    out = jax.block_until_ready(se_layer(x, w1, w2))
    ref = jax.block_until_ready(se_layer_ref(x, w1, w2))

    assert out.shape == x.shape
    assert jnp.allclose(out, ref, atol=1e-5, rtol=1e-5), "mismatch vs reference"
    print("KERNEL_OK")
</pallas_src>

<mosaic_0001>
module attributes {stable_mosaic.version = 11 : i64} {
  func.func @_se_kernel(%arg0: i32, %arg1: memref<2x32x256xf32, #tpu.memory_space<vmem>>, %arg2: memref<2x32xf32, #tpu.memory_space<vmem>>, %arg3: memref<32x2xf32, #tpu.memory_space<vmem>>, %arg4: memref<2x32x256xf32, #tpu.memory_space<vmem>>) attributes {dimension_semantics = [#tpu.dimension_semantics<parallel>], iteration_bounds = array<i64: 1>, scalar_prefetch = 0 : i64, scratch_operands = 0 : i64, tpu.core_type = #tpu.core_type<tc>, window_params = [{transform_indices = @transform_0, window_bounds = array<i64: 2, 32, 256>}, {pipeline_mode = #tpu.pipeline_mode<synchronous>, transform_indices = @transform_1, window_bounds = array<i64: 2, 32>}, {pipeline_mode = #tpu.pipeline_mode<synchronous>, transform_indices = @transform_2, window_bounds = array<i64: 32, 2>}, {transform_indices = @transform_3, window_bounds = array<i64: 2, 32, 256>}]} {
    %c0 = arith.constant 0 : index
    %c0_0 = arith.constant 0 : index
    %c0_1 = arith.constant 0 : index
    %0 = vector.load %arg1[%c0, %c0_0, %c0_1] : memref<2x32x256xf32, #tpu.memory_space<vmem>>, vector<2x32x256xf32>
    %cst = arith.constant dense<0.000000e+00> : vector<2x32xf32>
    %1 = vector.multi_reduction <add>, %0, %cst [2] : vector<2x32x256xf32> to vector<2x32xf32>
    %cst_2 = arith.constant 3.906250e-03 : f32
    %2 = vector.broadcast %cst_2 : f32 to vector<2x32xf32>
    %3 = arith.mulf %1, %2 : vector<2x32xf32>
    %c0_3 = arith.constant 0 : index
    %c0_4 = arith.constant 0 : index
    %4 = vector.load %arg2[%c0_3, %c0_4] : memref<2x32xf32, #tpu.memory_space<vmem>>, vector<2x32xf32>
    "tpu.trace_start"() <{level = 10 : i32, message = "bc,hc->bh"}> : () -> ()
    %cst_5 = arith.constant dense<0.000000e+00> : vector<2x2xf32>
    %5 = tpu.matmul %3, %4, %cst_5 {dimension_numbers = #tpu.dot_dimension_numbers<[1], [1], [0], [0], [0, 0, 1, 0], [], []>} : vector<2x32xf32>, vector<2x32xf32>, vector<2x2xf32> -> vector<2x2xf32>
    "tpu.trace_stop"() : () -> ()
    %cst_6 = arith.constant 0.000000e+00 : f32
    %6 = vector.broadcast %cst_6 : f32 to vector<2x2xf32>
    %7 = arith.maximumf %5, %6 : vector<2x2xf32>
    %c0_7 = arith.constant 0 : index
    %c0_8 = arith.constant 0 : index
    %8 = vector.load %arg3[%c0_7, %c0_8] : memref<32x2xf32, #tpu.memory_space<vmem>>, vector<32x2xf32>
    "tpu.trace_start"() <{level = 10 : i32, message = "bh,ch->bc"}> : () -> ()
    %cst_9 = arith.constant dense<0.000000e+00> : vector<2x32xf32>
    %9 = tpu.matmul %7, %8, %cst_9 {dimension_numbers = #tpu.dot_dimension_numbers<[1], [1], [0], [0], [0, 0, 1, 0], [], []>} : vector<2x2xf32>, vector<32x2xf32>, vector<2x32xf32> -> vector<2x32xf32>
    "tpu.trace_stop"() : () -> ()
    %10 = arith.negf %9 : vector<2x32xf32>
    %11 = math.exp %10 : vector<2x32xf32>
    %cst_10 = arith.constant 1.000000e+00 : f32
    %12 = vector.broadcast %cst_10 : f32 to vector<2x32xf32>
    %13 = arith.addf %12, %11 : vector<2x32xf32>
    %14 = arith.divf %12, %13 : vector<2x32xf32>
    %15 = vector.shape_cast %14 : vector<2x32xf32> to vector<2x32x1xf32>
    %16 = vector.broadcast %15 : vector<2x32x1xf32> to vector<2x32x256xf32>
    %17 = arith.mulf %0, %16 : vector<2x32x256xf32>
    %c0_11 = arith.constant 0 : index
    %c0_12 = arith.constant 0 : index
    %c0_13 = arith.constant 0 : index
    %18 = vector.load %arg4[%c0_11, %c0_12, %c0_13] : memref<2x32x256xf32, #tpu.memory_space<vmem>>, vector<2x32x256xf32>
    tpu.vector_store %arg4[%c0_11, %c0_12, %c0_13], %17 {strides = array<i32>} : memref<2x32x256xf32, #tpu.memory_space<vmem>>, vector<2x32x256xf32>,
    return
  }
  func.func @transform_0(%arg0: i32) -> (i32, i32, i32) {
    %c0_i32 = arith.constant 0 : i32
    %c0_i32_0 = arith.constant 0 : i32
    %c0_i32_1 = arith.constant 0 : i32
    return %arg0, %c0_i32, %c0_i32_0 : i32, i32, i32
  }
  func.func @transform_1(%arg0: i32) -> (i32, i32) {
    %c0_i32 = arith.constant 0 : i32
    %c0_i32_0 = arith.constant 0 : i32
    %c0_i32_1 = arith.constant 0 : i32
    return %c0_i32, %c0_i32_0 : i32, i32
  }
  func.func @transform_2(%arg0: i32) -> (i32, i32) {
    %c0_i32 = arith.constant 0 : i32
    %c0_i32_0 = arith.constant 0 : i32
    %c0_i32_1 = arith.constant 0 : i32
    return %c0_i32, %c0_i32_0 : i32, i32
  }
  func.func @transform_3(%arg0: i32) -> (i32, i32, i32) {
    %c0_i32 = arith.constant 0 : i32
    %c0_i32_0 = arith.constant 0 : i32
    %c0_i32_1 = arith.constant 0 : i32
    return %arg0, %c0_i32, %c0_i32_0 : i32, i32, i32
  }
}

</mosaic_0001>

<bundles_post_ra>
// kernel: tpu_custom_call.1
= control target key start
LH: loop header
LB: loop body
LE: loop exit
PB: predicated region body
PF: predicated region fallthrough
CT: control target
= control target key end

     0   :  { %8 = vsyncpa [#allocation3], 0  ;;  %s633_s0 = inlined_call_operand.hbm [shape: f32[2,32,256], index: 0, kind: input, shape index: {}, may-alias: {0,3}]   ;;  %s634_s1 = inlined_call_operand.vmem [shape: f32[2,32], index: 1, kind: input, shape index: {}]   ;;  %s635_s2 = inlined_call_operand.vmem [shape: f32[32,2], index: 2, kind: input, shape index: {}]   ;;  %s636_s3 = inlined_call_operand.hbm [shape: f32[2,32,256], index: 3, kind: output, shape index: {}, may-alias: {0,3}]  }
   0x1   :  { %9 = vsyncpa [#allocation4], 0  ;;  %s492_s12 = smov [#allocation2]   ;;  %s444_s16 = scalar_lea.hbm %s633_s0, 2048 }
   0x2   :  { %s15_s13 = sshll.u32 %s492_s12, 4  ;;  %p445_p0 = scmp.ne.s32.totalorder %s633_s0, %s444_s16  ;;  %s16_s13 = int_to_ptr.vmem [resolvable:$true] %s15_s13 }
   0x3   :  { %p448_p1 = scmp.lt.u32.totalorder %s444_s16, %s633_s0 }
   0x5   :  { %p450_p2 = pnand %p448_p1, %p445_p0 }
   0x7   :  { %453 = shalt.err (!%p450_p2)
}
   0x8   :  { %s454_s21 = scalar_lea.vmem %s16_s13, 2048  ;;  %p459_p4 = scmp.lt.s32.totalorder %s16_s13, %s16_s13 }
   0x9   :  { %p455_p3 = scmp.ne.s32.totalorder %s16_s13, %s454_s21  ;;  %p460_p5 = scmp.lt.s32.totalorder %s454_s21, %s454_s21 }
   0xb   :  { %p461_p6 = por %p460_p5, %p459_p4 }
   0xd   :  { %p462_p7 = pnand %p461_p6, %p455_p3 }
   0xf   :  { %465 = shalt.err (!%p462_p7)
}
  0x10   :  { %s493_s22 = smov 256   ;;  %s494_s23 = smov 16  }
  0x11   :  { %21 = dma.hbm_to_vmem [thread:$0]  %s633_s0, 2048, %s16_s13, [#allocation3], %s493_s22, %s493_s22, %s494_s23  }
  0x12   :  { %488 = dma.done.wait [#allocation3], 2048  }
  0x13   :  { %489 = vsyncadd [#allocation3], 4294965248  ;;  %v534_v0 = vld [vmem:[#allocation2 + $0x40] sm:$0xff]  ;;  %v536_v1 = vld [vmem:[#allocation2 + $0x48] sm:$0xff]  ;;  %v495_v24 = vmov 0.0   ;;  %vm134_vm0 = vcmask 261120   ;;  %v86_v33 = vlaneseq }
  0x14   :  { %v538_v2 = vld [vmem:[#allocation2] sm:$0xff]  ;;  %v57_v3 = vadd.f32 %v536_v1, %v534_v0  ;;  %v542_v4 = vld [vmem:[#allocation2 + $0x8] sm:$0xff]  ;;  %v544_v5 = vld [vmem:[#allocation2 + $0x50] sm:$0xff]  ;;  %409 = vmatprep.subr.mxu0 %v495_v24  ;;  %vm496_vm1 = vmmov 0   ;;  %vm215_vm2 = vcmask 15360   ;;  %v497_v28 = vmov 0.0|0.0  }
  0x15   :  { %v546_v6 = vld [vmem:[#allocation2 + $0x58] sm:$0xff]  ;;  %v45_v7 = vadd.f32 %v542_v4, %v538_v2  ;;  %v550_v8 = vld [vmem:[#allocation2 + $0x10] sm:$0xff]  ;;  %v558_v12 = vld [vmem:[#allocation2 + $0x60] sm:$0xff]  ;;  %411 = vmatprep.mubr.msk.f32.mxu0 %vm496_vm1, %v495_v24  ;;  %422 = vmatprep.mubr.msk.f32.mxu1 %vm496_vm1, %v495_v24  ;;  %v87_v35 = vand.u32 127, %v86_v33  ;;  %v89_v40 = vshrl.u32 %v86_v33, 7  ;;  %vm97_vm4 = vcmask 130112  }
  0x16   :  { %v552_v9 = vld [vmem:[#allocation2 + $0x18] sm:$0xff]  ;;  %58 = vadd.xlane.f32.xlu1 %v57_v3  ;;  %v60_v10 = vadd.f32 %v546_v6, %v544_v5  ;;  %v560_v13 = vld [vmem:[#allocation2 + $0x68] sm:$0xff]  ;;  %v562_v14 = vld [vmem:[#allocation2 + $0x20] sm:$0xff]  ;;  %425 = vmatprep.subr.bf16.mxu1 %v497_v28  ;;  %vm104_vm5 = vcmask 195712   ;;  %vm111_vm6 = vcmask 261312   ;;  %vm132_vm7 = vcmask 1041409  }
  0x17   :  { %46 = vadd.xlane.f32.xlu0 %v45_v7  ;;  %v48_v11 = vadd.f32 %v552_v9, %v550_v8  ;;  %v564_v15 = vld [vmem:[#allocation2 + $0x28] sm:$0xff]  ;;  %v63_v16 = vadd.f32 %v560_v13, %v558_v12  ;;  %v570_v18 = vld [vmem:[#allocation2 + $0x70] sm:$0xff]  ;;  %v572_v19 = vld [vmem:[#allocation2 + $0x78] sm:$0xff]  ;;  %v92_v37 = vadd.s32 4294967288, %v87_v35  ;;  %v99_v39 = vadd.s32 4294967280, %v87_v35 }
  0x18   :  { %v51_v17 = vadd.f32 %v564_v15, %v562_v14  ;;  %v574_v20 = vld [vmem:[#allocation2 + $0x30] sm:$0xff]  ;;  %v576_v21 = vld [vmem:[#allocation2 + $0x38] sm:$0xff]  ;;  %v66_v22 = vadd.f32 %v572_v19, %v570_v18  ;;  %v77_v25 = vld [vmem:[%s634_s1] sm:$0x3]  ;;  %v106_v44 = vadd.s32 4294967272, %v87_v35  ;;  %v90_v48 = vsub.s32 %v87_v35, %v89_v40 }
  0x19   :  { %v54_v23 = vadd.f32 %v576_v21, %v574_v20  ;;  %410 = vmatpush3.xpose.msk.msra.mxu0 %vm134_vm0, %v77_v25  ;;  %v211_v26 = vld [vmem:[%s635_s2] sm:$0xff]  ;;  %v212_v27 = vld [vmem:[%s635_s2 + $0x8] sm:$0xff]  ;;  %vm427_vm3 = vmpackc.low %vm215_vm2, %vm215_vm2  ;;  %v95_v42 = vsub.s32 %v92_v37, %v89_v40  ;;  %v102_v46 = vsub.s32 %v99_v39, %v89_v40  ;;  %v328_v37 = vsub.s32 1, %v89_v40 }
  0x1a   :  { %61 = vadd.xlane.f32.xlu1 %v60_v10  ;;  %v426_v29 = vpack.c.bf16 %v212_v27, %v211_v26  ;;  %v213_v30 = vld [vmem:[%s635_s2 + $0x10] sm:$0xff]  ;;  %v214_v31 = vld [vmem:[%s635_s2 + $0x18] sm:$0xff]  ;;  %v109_v55 = vsub.s32 %v106_v44, %v89_v40  ;;  %s498_s2 = smov [#allocation5]  }
  0x1b   :  { %49 = vadd.xlane.f32.xlu0 %v48_v11  ;;  %v430_v32 = vpack.c.bf16 %v214_v31, %v213_v30  ;;  %s382_s7 = sshll.u32 %s498_s2, 4  ;;  %s383_s7 = int_to_ptr.vmem [resolvable:$true] %s382_s7 }
  0x1c   :  { %428 = vmatpush3.bf16.xpose.msk.msra.mxu1 %vm427_vm3, %v426_v29  ;;  %s466_s8 = scalar_lea.vmem %s383_s7, 2048  ;;  %p471_p9 = scmp.lt.s32.totalorder %s383_s7, %s383_s7 }
  0x1d   :  { %429 = vmatprep.subr.bf16.mxu1 %v497_v28  ;;  %p467_p8 = scmp.ne.s32.totalorder %s383_s7, %s466_s8  ;;  %p472_p10 = scmp.lt.s32.totalorder %s466_s8, %s466_s8 }
  0x1e   :  { %64 = vadd.xlane.f32.xlu1 %v63_v16 }
  0x1f   :  { %52 = vadd.xlane.f32.xlu0 %v51_v17  ;;  %p473_p11 = por %p472_p10, %p471_p9 }
  0x21   :  { %p474_p12 = pnand %p473_p11, %p467_p8 }
  0x22   :  { %67 = vadd.xlane.f32.xlu1 %v66_v22 }
  0x23   :  { %55 = vadd.xlane.f32.xlu0 %v54_v23 }
  0x24   :  { %432 = vmatpush3.bf16.xpose.msk.msra.mxu1 %vm427_vm3, %v430_v32 }
  0xa3   :  { %v59_v34 = vpop.xlane.xlu1 %58 }
  0xa4   :  { %v47_v36 = vpop.xlane.xlu0 %46  ;;  %v73_v49 = vmul.f32 0.00390625, %v59_v34  ;;  %v309_v34 = vsub.s32 0, %v89_v40 }
  0xa5   :  { %v69_v52 = vmul.f32 0.00390625, %v47_v36 }
  0xa6   :  { %v116_v59 = vrot.slane %v73_v49, %v90_v48 }
  0xa7   :  { %v62_v38 = vpop.xlane.xlu1 %61  ;;  %v91_v63 = vrot.slane %v69_v52, %v90_v48 }
  0xa8   :  { %v50_v41 = vpop.xlane.xlu0 %49  ;;  %v74_v43 = vmul.f32 0.00390625, %v62_v38 }
  0xa9   :  { %v70_v45 = vmul.f32 0.00390625, %v50_v41 }
  0xaa   :  { %v120_v54 = vrot.slane %v74_v43, %v95_v42 }
  0xab   :  { %v65_v47 = vpop.xlane.xlu1 %64  ;;  %v96_v56 = vrot.slane %v70_v45, %v95_v42 }
  0xac   :  { %v75_v50 = vmul.f32 0.00390625, %v65_v47  ;;  %v53_v51 = vpop.xlane.xlu0 %52  ;;  %v121_v7 = vsel %vm97_vm4, %v120_v54, %v116_v59 }
  0xad   :  { %v71_v53 = vmul.f32 0.00390625, %v53_v51  ;;  %v98_v11 = vsel %vm97_vm4, %v96_v56, %v91_v63 }
  0xae   :  { %v125_v57 = vrot.slane %v75_v50, %v102_v46 }
  0xaf   :  { %v68_v58 = vpop.xlane.xlu1 %67  ;;  %v103_v60 = vrot.slane %v71_v53, %v102_v46 }
  0xb0   :  { %v76_v61 = vmul.f32 0.00390625, %v68_v58  ;;  %v56_v62 = vpop.xlane.xlu0 %55  ;;  %v126_v16 = vsel %vm104_vm5, %v125_v57, %v121_v7 }
  0xb1   :  { %v72_v3 = vmul.f32 0.00390625, %v56_v62  ;;  %v105_v22 = vsel %vm104_vm5, %v103_v60, %v98_v11 }
  0xb2   :  { %v130_v10 = vrot.slane %v76_v61, %v109_v55 }
  0xb3   :  { %v110_v17 = vrot.slane %v72_v3, %v109_v55 }
  0xb4   :  { %v131_v23 = vsel %vm111_vm6, %v130_v10, %v126_v16 }
  0xb5   :  { %v112_v24 = vsel %vm111_vm6, %v110_v17, %v105_v22 }
  0xb6   :  { %v133_v25 = vsel %vm132_vm7, %v131_v23, %v112_v24 }
  0xb7   :  { %412 = vmatmul.mubr.msk.f32.vlgmr.msra.gmra.mrb[0].mxu0 %vm134_vm0, %v133_v25 }
 0x18a   :  { %v206_v26 = vpop.f32.mrb[0].mxu0 }
 0x18b   :  { %v210_v27 = vmax.f32 %v206_v26, 0.0  ;;  %v413_v28 = vpop.f32.mrb[1].mxu0 }
 0x18d   :  { %423 = vmatmul.mubr.msk.f32.vlgmr.msra.gmra.mrb[0].mxu1 %vm215_vm2, %v210_v27 }
 0x260   :  { %v297_v29 = vpop.f32.mrb[0].mxu1 }
 0x261   :  { %v401_v30 = vmul.f32 -1.442695, %v297_v29  ;;  %v424_v31 = vpop.f32.mrb[1].mxu1 }
 0x263   :  { %440 = vpow2.f32 %v401_v30 }
 0x26d   :  { %v441_v32 = vpop.eup %440 }
 0x26e   :  { %v304_v33 = vadd.f32 1.0, %v441_v32 }
 0x270   :  { %442 = vrcp.f32 %v304_v33 }
 0x27a   :  { %v443_v35 = vpop.eup %442 }
 0x27b   :  { %v310_v36 = vrot.slane %v443_v35, %v309_v34  ;;  %v329_v38 = vrot.slane %v443_v35, %v328_v37 }
 0x27d   :  { %316 = vbcast.lane.b32.xlu1 %v310_v36, 264  ;;  %312 = vbcast.lane.b32.xlu0 %v310_v36, 256 }
 0x281   :  { %320 = vbcast.lane.b32.xlu1 %v310_v36, 272  ;;  %331 = vbcast.lane.b32.xlu0 %v329_v38, 256 }
 0x285   :  { %324 = vbcast.lane.b32.xlu1 %v310_v36, 280  ;;  %339 = vbcast.lane.b32.xlu0 %v329_v38, 272 }
 0x289   :  { %335 = vbcast.lane.b32.xlu1 %v329_v38, 264 }
 0x28d   :  { %343 = vbcast.lane.b32.xlu1 %v329_v38, 280 }
 0x2ef   :  { %v317_v39 = vpop.permute.xlu1 %316  ;;  %v313_v41 = vpop.permute.xlu0 %312 }
 0x2f0   :  { %v347_v42 = vmul.f32 %v317_v39, %v550_v8  ;;  %v348_v43 = vmul.f32 %v317_v39, %v552_v9  ;;  %v345_v44 = vmul.f32 %v313_v41, %v538_v2  ;;  %v346_v45 = vmul.f32 %v313_v41, %v542_v4 }
 0x2f2   :  { %363 = vst [vmem:[#allocation5 + $0x10] sm:$0xff] %v347_v42  ;;  %364 = vst [vmem:[#allocation5 + $0x18] sm:$0xff] %v348_v43 }
 0x2f3   :  { %361 = vst [vmem:[#allocation5] sm:$0xff] %v345_v44  ;;  %362 = vst [vmem:[#allocation5 + $0x8] sm:$0xff] %v346_v45  ;;  %v321_v40 = vpop.permute.xlu1 %320  ;;  %v332_v46 = vpop.permute.xlu0 %331 }
 0x2f4   :  { %v349_v47 = vmul.f32 %v321_v40, %v562_v14  ;;  %v350_v48 = vmul.f32 %v321_v40, %v564_v15  ;;  %v353_v49 = vmul.f32 %v332_v46, %v534_v0  ;;  %v354_v8 = vmul.f32 %v332_v46, %v536_v1 }
 0x2f6   :  { %365 = vst [vmem:[#allocation5 + $0x20] sm:$0xff] %v349_v47  ;;  %366 = vst [vmem:[#allocation5 + $0x28] sm:$0xff] %v350_v48 }
 0x2f7   :  { %369 = vst [vmem:[#allocation5 + $0x40] sm:$0xff] %v353_v49  ;;  %370 = vst [vmem:[#allocation5 + $0x48] sm:$0xff] %v354_v8  ;;  %v325_v2 = vpop.permute.xlu1 %324  ;;  %v340_v4 = vpop.permute.xlu0 %339 }
 0x2f8   :  { %v351_v9 = vmul.f32 %v325_v2, %v574_v20  ;;  %v352_v50 = vmul.f32 %v325_v2, %v576_v21  ;;  %v357_v51 = vmul.f32 %v340_v4, %v558_v12  ;;  %v358_v14 = vmul.f32 %v340_v4, %v560_v13 }
 0x2fa   :  { %367 = vst [vmem:[#allocation5 + $0x30] sm:$0xff] %v351_v9  ;;  %368 = vst [vmem:[#allocation5 + $0x38] sm:$0xff] %v352_v50 }
 0x2fb   :  { %373 = vst [vmem:[#allocation5 + $0x60] sm:$0xff] %v357_v51  ;;  %374 = vst [vmem:[#allocation5 + $0x68] sm:$0xff] %v358_v14  ;;  %v336_v0 = vpop.permute.xlu1 %335 }
 0x2fc   :  { %v355_v1 = vmul.f32 %v336_v0, %v544_v5  ;;  %v356_v15 = vmul.f32 %v336_v0, %v546_v6 }
 0x2fe   :  { %371 = vst [vmem:[#allocation5 + $0x50] sm:$0xff] %v355_v1  ;;  %372 = vst [vmem:[#allocation5 + $0x58] sm:$0xff] %v356_v15 }
 0x2ff   :  { %v344_v20 = vpop.permute.xlu1 %343 }
 0x300   :  { %v359_v21 = vmul.f32 %v344_v20, %v570_v18  ;;  %v360_v12 = vmul.f32 %v344_v20, %v572_v19 }
 0x302   :  { %375 = vst [vmem:[#allocation5 + $0x70] sm:$0xff] %v359_v21  ;;  %376 = vst [vmem:[#allocation5 + $0x78] sm:$0xff] %v360_v12 }
 0x303   :  { %477 = shalt.err (!%p474_p12)
}
 0x304   :  { %s478_s11 = scalar_lea.hbm %s636_s3, 2048 }
 0x305   :  { %p479_p13 = scmp.ne.s32.totalorder %s636_s3, %s478_s11  ;;  %p482_p0 = scmp.lt.u32.totalorder %s478_s11, %s636_s3 }
 0x307   :  { %p484_p1 = pnand %p482_p0, %p479_p13 }
 0x309   :  { %487 = shalt.err (!%p484_p1)
}
 0x30a   :  { %388 = dma.vmem_to_hbm [thread:$0]  %s383_s7, 2048, %s636_s3, [#allocation4], %s493_s22, %s493_s22, %s494_s23  }
 0x30b   :  { %490 = dma.done.wait [#allocation4], 2048  }
 0x30c   :  { %491 = vsyncadd [#allocation4], 4294965248 }
 0x30d   :  { %392 = vsyncpa [#allocation3], 1 }
 0x30e   :  { %393 = vsyncpa [#allocation4], 1 }

</bundles_post_ra>
